<compile_context>
chip_gen: v7x
topology: tpu7x:2x2x1
jax: 0.10.0
libtpu: 0.0.40
codegen_flags: <defaults>
</compile_context>

<pallas_src>
import jax
import jax.numpy as jnp
from jax.experimental import pallas as pl
from jax.experimental.pallas import tpu as pltpu

LANE = 128  # TPU lane width; head output padded to this for unmasked stores.


# ----------------------------- Pallas kernel -------------------------------
def _fused_kernel(tok_ref, table_ref, adj_ref, wg_ref, bg_ref, wr_ref, br_ref,
                  out_ref):
    """Fused encoder gather + GCN layer + regression head.

    tok_ref:   [N, 1]     int32 token ids
    table_ref: [V, D]     bf16 embedding table
    adj_ref:   [N, N]     bf16 (row-normalized) adjacency
    wg_ref:    [D, H]     bf16 graph weight
    bg_ref:    [1, H]     f32  graph bias
    wr_ref:    [H, LANE]  bf16 head weight, zero-padded along lanes
    br_ref:    [1, LANE]  f32  head bias, zero-padded along lanes
    out_ref:   [N, LANE]  f32  lane-dense output (column 0 is the real output)
    """
    n = tok_ref.shape[0]
    v = table_ref.shape[0]

    # --- encoder: embedding gather as a one-hot @ table MXU matmul ----------
    tok = tok_ref[...]                                         # [N, 1] int32
    iota = jax.lax.broadcasted_iota(jnp.int32, (n, v), 1)      # [N, V]
    onehot = (tok == iota).astype(table_ref.dtype)             # [N, V] bf16
    e = jnp.dot(onehot, table_ref[...],
                preferred_element_type=jnp.float32)            # [N, D] f32 (exact)

    # --- graph_model: relu(A @ E @ Wg + bg), contracted as A @ (E @ Wg) ------
    ew = jnp.dot(e.astype(wg_ref.dtype), wg_ref[...],
                 preferred_element_type=jnp.float32)           # [N, H] f32
    h = jnp.dot(adj_ref[...], ew.astype(adj_ref.dtype),
                preferred_element_type=jnp.float32)            # [N, H] f32
    h = jnp.maximum(h + bg_ref[...], 0.0)                      # bias + ReLU in f32

    # --- regression_model: lane-padded linear head (lane-dense store) -------
    y = jnp.dot(h.astype(wr_ref.dtype), wr_ref[...],
                preferred_element_type=jnp.float32)            # [N, LANE] f32
    out_ref[...] = (y + br_ref[...]).astype(out_ref.dtype)


# ------------------------------- wrapper ------------------------------------
def fused_forward(tokens, embed_table, adj, wg, bg, wr, br,
                  *, matmul_dtype=jnp.bfloat16):
    n = tokens.shape[0]
    v, d = embed_table.shape
    h = wg.shape[1]
    out_dim = wr.shape[1]

    # Tokens as a small [N, 1] int32 VMEM operand (drives the in-kernel gather).
    tok2d = tokens.astype(jnp.int32).reshape(n, 1)

    # bf16 matmul operands (halves DMA bytes, matches v6e/v7x MXU native dtype).
    table_mm = embed_table.astype(matmul_dtype)
    adj_mm = adj.astype(matmul_dtype)
    wg_mm = wg.astype(matmul_dtype)

    # Lane-dense head: pad OUT -> LANE so the kernel writes full 128-lane rows.
    wr_pad = jnp.zeros((h, LANE), matmul_dtype).at[:, :out_dim].set(
        wr.astype(matmul_dtype))
    br_pad = jnp.zeros((1, LANE), jnp.float32).at[:, :out_dim].set(
        br.astype(jnp.float32))

    vmem = pl.BlockSpec(memory_space=pltpu.MemorySpace.VMEM)

    y_pad = pl.pallas_call(
        _fused_kernel,
        out_shape=jax.ShapeDtypeStruct((n, LANE), jnp.float32),
        in_specs=[vmem] * 7,
        out_specs=vmem,
    )(tok2d, table_mm, adj_mm, wg_mm, bg.astype(jnp.float32), wr_pad, br_pad)

    return y_pad[:, :out_dim]


# ---------------------------------- main ------------------------------------
if __name__ == "__main__":
    key = jax.random.PRNGKey(0)
    k_tok, k_tab, k_adj, k_wg, k_bg, k_wr, k_br = jax.random.split(key, 7)

    N = 8      # nodes / sequence positions
    V = 64     # vocab size
    D = 32     # embedding dim
    H = 32     # graph hidden dim
    OUT = 1    # regression output dim

    tokens = jax.random.randint(k_tok, (N,), 0, V)
    embed_table = jax.random.normal(k_tab, (V, D), dtype=jnp.float32) * 0.1

    # symmetric row-normalized adjacency
    adj_raw = (jax.random.uniform(k_adj, (N, N)) > 0.5).astype(jnp.float32)
    adj_raw = adj_raw + adj_raw.T + jnp.eye(N, dtype=jnp.float32)
    adj = adj_raw / jnp.sum(adj_raw, axis=-1, keepdims=True)

    wg = jax.random.normal(k_wg, (D, H), dtype=jnp.float32) * 0.1
    bg = jax.random.normal(k_bg, (1, H), dtype=jnp.float32) * 0.1
    wr = jax.random.normal(k_wr, (H, OUT), dtype=jnp.float32) * 0.1
    br = jax.random.normal(k_br, (1, OUT), dtype=jnp.float32) * 0.1

    out = jax.block_until_ready(
        fused_forward(tokens, embed_table, adj, wg, bg, wr, br))
    assert out.shape == (N, OUT)

    # --- tight check: pure-JAX reference mirroring the kernel's bf16/f32 path
    bf = jnp.bfloat16
    e_ref = embed_table.astype(bf).astype(jnp.float32)[tokens]
    ew_ref = jnp.dot(e_ref.astype(bf), wg.astype(bf),
                     preferred_element_type=jnp.float32)
    h_ref = jnp.dot(adj.astype(bf), ew_ref.astype(bf),
                    preferred_element_type=jnp.float32)
    h_ref = jnp.maximum(h_ref + bg, 0.0)
    y_ref = jnp.dot(h_ref.astype(bf), wr.astype(bf),
                    preferred_element_type=jnp.float32) + br
    assert jnp.allclose(out, y_ref, atol=1e-3, rtol=1e-3), \
        "mismatch vs bf16-mirrored reference"

    # --- loose check vs the original f32 module semantics (bf16 operand error)
    f32_ref = jnp.maximum(adj @ embed_table[tokens] @ wg + bg, 0.0) @ wr + br
    assert jnp.allclose(out, f32_ref, atol=5e-2, rtol=5e-2), \
        "drift vs f32 module semantics"

    print("KERNEL_OK")
</pallas_src>

<mosaic_0001>
module attributes {stable_mosaic.version = 11 : i64} {
  func.func @_fused_kernel(%arg0: memref<8x1xi32, #tpu.memory_space<vmem>>, %arg1: memref<64x32xbf16, #tpu.memory_space<vmem>>, %arg2: memref<8x8xbf16, #tpu.memory_space<vmem>>, %arg3: memref<32x32xbf16, #tpu.memory_space<vmem>>, %arg4: memref<1x32xf32, #tpu.memory_space<vmem>>, %arg5: memref<32x128xbf16, #tpu.memory_space<vmem>>, %arg6: memref<1x128xf32, #tpu.memory_space<vmem>>, %arg7: memref<8x128xf32, #tpu.memory_space<vmem>>) attributes {dimension_semantics = [], scalar_prefetch = 0 : i64, scratch_operands = 0 : i64, tpu.core_type = #tpu.core_type<tc>} {
    %c0 = arith.constant 0 : index
    %c0_0 = arith.constant 0 : index
    %0 = vector.load %arg0[%c0, %c0_0] : memref<8x1xi32, #tpu.memory_space<vmem>>, vector<8x1xi32>
    %1 = tpu.iota {dimensions = array<i32: 1>} : vector<8x64xi32>
    %2 = vector.broadcast %0 : vector<8x1xi32> to vector<8x64xi32>
    %3 = arith.cmpi eq, %2, %1 : vector<8x64xi32>
    %4 = arith.extui %3 : vector<8x64xi1> to vector<8x64xi32>
    %5 = arith.sitofp %4 : vector<8x64xi32> to vector<8x64xf32>
    %6 = arith.truncf %5 : vector<8x64xf32> to vector<8x64xbf16>
    %c0_1 = arith.constant 0 : index
    %c0_2 = arith.constant 0 : index
    %7 = vector.load %arg1[%c0_1, %c0_2] : memref<64x32xbf16, #tpu.memory_space<vmem>>, vector<64x32xbf16>
    %cst = arith.constant dense<0.000000e+00> : vector<8x32xf32>
    %8 = tpu.matmul %6, %7, %cst {dimension_numbers = #tpu.dot_dimension_numbers<[1], [0], [0], [1], [0, 0, 1, 1], [], []>} : vector<8x64xbf16>, vector<64x32xbf16>, vector<8x32xf32> -> vector<8x32xf32>
    %9 = arith.truncf %8 : vector<8x32xf32> to vector<8x32xbf16>
    %c0_3 = arith.constant 0 : index
    %c0_4 = arith.constant 0 : index
    %10 = vector.load %arg3[%c0_3, %c0_4] : memref<32x32xbf16, #tpu.memory_space<vmem>>, vector<32x32xbf16>
    %cst_5 = arith.constant dense<0.000000e+00> : vector<8x32xf32>
    %11 = tpu.matmul %9, %10, %cst_5 {dimension_numbers = #tpu.dot_dimension_numbers<[1], [0], [0], [1], [0, 0, 1, 1], [], []>} : vector<8x32xbf16>, vector<32x32xbf16>, vector<8x32xf32> -> vector<8x32xf32>
    %c0_6 = arith.constant 0 : index
    %c0_7 = arith.constant 0 : index
    %12 = vector.load %arg2[%c0_6, %c0_7] : memref<8x8xbf16, #tpu.memory_space<vmem>>, vector<8x8xbf16>
    %13 = arith.truncf %11 : vector<8x32xf32> to vector<8x32xbf16>
    %cst_8 = arith.constant dense<0.000000e+00> : vector<8x32xf32>
    %14 = tpu.matmul %12, %13, %cst_8 {dimension_numbers = #tpu.dot_dimension_numbers<[1], [0], [0], [1], [0, 0, 1, 1], [], []>} : vector<8x8xbf16>, vector<8x32xbf16>, vector<8x32xf32> -> vector<8x32xf32>
    %c0_9 = arith.constant 0 : index
    %c0_10 = arith.constant 0 : index
    %15 = vector.load %arg4[%c0_9, %c0_10] : memref<1x32xf32, #tpu.memory_space<vmem>>, vector<1x32xf32>
    %16 = vector.broadcast %15 : vector<1x32xf32> to vector<8x32xf32>
    %17 = arith.addf %14, %16 : vector<8x32xf32>
    %cst_11 = arith.constant 0.000000e+00 : f32
    %18 = vector.broadcast %cst_11 : f32 to vector<8x32xf32>
    %19 = arith.maximumf %17, %18 : vector<8x32xf32>
    %20 = arith.truncf %19 : vector<8x32xf32> to vector<8x32xbf16>
    %c0_12 = arith.constant 0 : index
    %c0_13 = arith.constant 0 : index
    %21 = vector.load %arg5[%c0_12, %c0_13] : memref<32x128xbf16, #tpu.memory_space<vmem>>, vector<32x128xbf16>
    %cst_14 = arith.constant dense<0.000000e+00> : vector<8x128xf32>
    %22 = tpu.matmul %20, %21, %cst_14 {dimension_numbers = #tpu.dot_dimension_numbers<[1], [0], [0], [1], [0, 0, 1, 1], [], []>} : vector<8x32xbf16>, vector<32x128xbf16>, vector<8x128xf32> -> vector<8x128xf32>
    %c0_15 = arith.constant 0 : index
    %c0_16 = arith.constant 0 : index
    %23 = vector.load %arg6[%c0_15, %c0_16] : memref<1x128xf32, #tpu.memory_space<vmem>>, vector<1x128xf32>
    %24 = vector.broadcast %23 : vector<1x128xf32> to vector<8x128xf32>
    %25 = arith.addf %22, %24 : vector<8x128xf32>
    %c0_17 = arith.constant 0 : index
    %c0_18 = arith.constant 0 : index
    %26 = vector.load %arg7[%c0_17, %c0_18] : memref<8x128xf32, #tpu.memory_space<vmem>>, vector<8x128xf32>
    tpu.vector_store %arg7[%c0_17, %c0_18], %25 {strides = array<i32>} : memref<8x128xf32, #tpu.memory_space<vmem>>, vector<8x128xf32>,
    return
  }
}

</mosaic_0001>

<bundles_post_ra>
// kernel: tpu_custom_call.1
= control target key start
LH: loop header
LB: loop body
LE: loop exit
PB: predicated region body
PF: predicated region fallthrough
CT: control target
= control target key end

     0   :  { %v414_v2 = vmov 0   ;;  %v415_v3 = vmov 0.0   ;;  %vm416_vm0 = vmmov 0   ;;  %s512_s0 = inlined_call_operand.vmem [shape: s32[8,1], index: 0, kind: input, shape index: {}]   ;;  %s513_s1 = inlined_call_operand.vmem [shape: bf16[64,32], index: 1, kind: input, shape index: {}]   ;;  %s514_s2 = inlined_call_operand.vmem [shape: bf16[8,8], index: 2, kind: input, shape index: {}]   ;;  %s515_s3 = inlined_call_operand.vmem [shape: bf16[32,32], index: 3, kind: input, shape index: {}]   ;;  %s516_s4 = inlined_call_operand.vmem [shape: f32[1,32], index: 4, kind: input, shape index: {}]   ;;  %s517_s5 = inlined_call_operand.vmem [shape: bf16[32,128], index: 5, kind: input, shape index: {}]   ;;  %s518_s6 = inlined_call_operand.vmem [shape: f32[1,128], index: 6, kind: input, shape index: {}]   ;;  %s519_s7 = inlined_call_operand.hbm [shape: f32[8,128], index: 7, kind: output, shape index: {}]  }
   0x1   :  { %v28_v0 = vld [vmem:[%s512_s0] sm:$0xff]  ;;  %381 = vset.pattern.permute.xlu0 %v414_v2  ;;  %343 = vmatprep.subr.bf16.mxu0 %v415_v3  ;;  %v383_v4 = vld [vmem:[%s513_s1 + $0x8] sm:$0xff]   ;;  %v384_v5 = vld [vmem:[%s513_s1 + $0x10] sm:$0xff]  }
   0x2   :  { %v382_v1 = vld [vmem:[%s513_s1] sm:$0xff]   ;;  %32 = vperm.xlu0 %381, %v28_v0   ;;  %355 = vmatprep.subr.bf16.mxu1 %v415_v3 }
   0x3   :  { %344 = vmatpush3.bf16.msra.mxu0 %v382_v1  ;;  %351 = vmatprep.mubr.msk.bf16.mxu0 %vm416_vm0, %v415_v3  ;;  %v386_v6 = vld [vmem:[%s515_s3] sm:$0xff]  }
   0x4   :  { %345 = vmatprep.subr.bf16.mxu0 %v415_v3  ;;  %359 = vmatprep.mubr.msk.bf16.mxu1 %vm416_vm0, %v415_v3 }
   0x7   :  { %346 = vmatpush3.bf16.msra.mxu0 %v383_v4 }
   0x8   :  { %347 = vmatprep.subr.bf16.mxu0 %v415_v3 }
   0x9   :  { %12 = vsyncpa [#allocation3], 0  ;;  %356 = vmatpush3.bf16.msra.mxu1 %v386_v6  ;;  %v385_v7 = vld [vmem:[%s513_s1 + $0x18] sm:$0xff]   ;;  %v29_v8 = vlaneseq  ;;  %vm70_vm2 = vcmask 523264   ;;  %v387_v13 = vld [vmem:[%s515_s3 + $0x8] sm:$0xff]   ;;  %vm131_vm3 = vcmask 261120  }
   0xa   :  { %357 = vmatprep.subr.bf16.mxu1 %v415_v3  ;;  %vm188_vm4 = vcmask 1043456   ;;  %v175_v25 = vld [vmem:[%s514_s2] sm:$0xf]  ;;  %vm184_vm5 = vcmask 64512   ;;  %v389_v27 = vld [vmem:[%s517_s5 + $0x8] sm:$0xff]   ;;  %s417_s21 = smov [#allocation2]  }
   0xb   :  { %348 = vmatpush3.bf16.msra.mxu0 %v384_v5  ;;  %v30_v9 = vand.u32 127, %v29_v8  ;;  %v388_v26 = vld [vmem:[%s517_s5] sm:$0xff]   ;;  %s307_s5 = sshll.u32 %s417_s21, 4  ;;  %s308_s5 = int_to_ptr.vmem [resolvable:$true] %s307_s5 }
   0xc   :  { %349 = vmatprep.subr.bf16.mxu0 %v415_v3  ;;  %v324_v28 = vld [vmem:[%s516_s4] ss:$0 sm:$0xff]  ;;  %s390_s4 = scalar_lea.vmem %s308_s5, 128  ;;  %p395_p1 = scmp.lt.s32.totalorder %s308_s5, %s308_s5 }
   0xd   :  { %358 = vmatpush3.bf16.msra.mxu1 %v387_v13  ;;  %v326_v36 = vld [vmem:[%s518_s6] ss:$0 sm:$0xff]  ;;  %p391_p0 = scmp.ne.s32.totalorder %s308_s5, %s390_s4  ;;  %p396_p2 = scmp.lt.s32.totalorder %s390_s4, %s390_s4 }
   0xe   :  { %363 = vmatprep.subr.bf16.mxu1 %v415_v3 }
   0xf   :  { %350 = vmatpush3.bf16.msra.mxu0 %v385_v7  ;;  %p397_p3 = por %p396_p2, %p395_p1 }
  0x10   :  { %369 = vmatprep.subr.bf16.mxu0 %v415_v3 }
  0x11   :  { %p398_p4 = pnand %p397_p3, %p391_p0 }
  0x81   :  { %v33_v10 = vpop.permute.xlu0 %32 }
  0x82   :  { %vm34_vm1 = vcmp.eq.s32.totalorder %v33_v10, %v30_v9 }
  0x83   :  { %v315_v11 = vsel %vm34_vm1, 1.0, %v415_v3 }
  0x84   :  { %v37_v12 = vpack.c.bf16 %v315_v11, %v315_v11 }
  0x86   :  { %352 = vmatmul.mubr.msk.bf16.vlgmr.msra.gmra.mrb[0].mxu0 %vm70_vm2, %v37_v12 }
  0x87   :  { %373 = vmatprep.mubr.msk.bf16.mxu0 %vm416_vm0, %v415_v3  ;;  %370 = vmatpush3.bf16.msra.mxu0 %v388_v26 }
  0x88   :  { %371 = vmatprep.subr.bf16.mxu0 %v415_v3 }
  0x8b   :  { %372 = vmatpush3.bf16.msra.mxu0 %v389_v27 }
 0x159   :  { %v108_v14 = vpop.f32.mrb[0].mxu0 }
 0x15a   :  { %v114_v15 = vpack.c.bf16 %v108_v14, %v108_v14  ;;  %v353_v16 = vpop.f32.mrb[1].mxu0 }
 0x15b   :  { %v111_v17 = vpop.f32.mrb[2].mxu0 }
 0x15c   :  { %v354_v18 = vpop.f32.mrb[3].mxu0  ;;  %360 = vmatmul.mubr.msk.bf16.vlgmr.msra.gmra.mrb[0].mxu1 %vm131_vm3, %v114_v15 }
 0x15d   :  { %365 = vmatprep.mubr.msk.bf16.mxu1 %vm416_vm0, %v415_v3 }
 0x22f   :  { %v169_v19 = vpop.f32.mrb[0].mxu1 }
 0x230   :  { %v176_v20 = vpack.c.bf16 %v169_v19, %v169_v19  ;;  %v361_v21 = vpop.f32.mrb[1].mxu1 }
 0x231   :  { %v172_v22 = vpop.f32.mrb[2].mxu1 }
 0x232   :  { %v190_v23 = vsel %vm188_vm4, %v176_v20, 0  ;;  %v362_v24 = vpop.f32.mrb[3].mxu1 }
 0x233   :  { %364 = vmatpush3.bf16.msra.mxu1 %v190_v23 }
 0x236   :  { %366 = vmatmul.mubr.msk.bf16.vlgmr.msra.gmra.mrb[4].mxu1 %vm184_vm5, %v175_v25 }
 0x309   :  { %v226_v29 = vpop.f32.mrb[4].mxu1 }
 0x30a   :  { %v227_v30 = vadd.f32 %v324_v28, %v226_v29  ;;  %v367_v31 = vpop.f32.mrb[5].mxu1 }
 0x30b   :  { %v229_v32 = vpop.f32.mrb[6].mxu1 }
 0x30c   :  { %v232_v33 = vmax.f32 %v227_v30, 0.0  ;;  %v368_v34 = vpop.f32.mrb[7].mxu1 }
 0x30e   :  { %v233_v35 = vpack.c.bf16 %v232_v33, %v232_v33 }
 0x310   :  { %374 = vmatmul.mubr.msk.bf16.vlgmr.msra.gmra.mrb[4].mxu0 %vm131_vm3, %v233_v35 }
 0x3e3   :  { %v294_v37 = vpop.f32.mrb[4].mxu0 }
 0x3e4   :  { %v295_v38 = vadd.f32 %v326_v36, %v294_v37  ;;  %v375_v39 = vpop.f32.mrb[5].mxu0 }
 0x3e5   :  { %v297_v40 = vpop.f32.mrb[6].mxu0 }
 0x3e6   :  { %300 = vst [vmem:[#allocation2] sm:$0xff] %v295_v38  ;;  %v376_v41 = vpop.f32.mrb[7].mxu0 }
 0x3e7   :  { %401 = shalt.err (!%p398_p4)
}
 0x3e8   :  { %s402_s6 = scalar_lea.hbm %s519_s7, 128 }
 0x3e9   :  { %p403_p5 = scmp.ne.s32.totalorder %s519_s7, %s402_s6  ;;  %p406_p6 = scmp.lt.u32.totalorder %s402_s6, %s519_s7 }
 0x3eb   :  { %p408_p7 = pnand %p406_p6, %p403_p5 }
 0x3ed   :  { %411 = shalt.err (!%p408_p7)
}
 0x3ee   :  { %310 = dma.vmem_to_hbm [thread:$0]  %s308_s5, 128, %s519_s7, [#allocation3]  }
 0x3ef   :  { %412 = dma.done.wait [#allocation3], 128  }
 0x3f0   :  { %413 = vsyncadd [#allocation3], 4294967168 }
 0x3f1   :  { %314 = vsyncpa [#allocation3], 1 }

</bundles_post_ra>
